<compile_context>
chip_gen: v7x
topology: tpu7x:2x2x1
jax: 0.10.0
libtpu: 0.0.40
codegen_flags: <defaults>
</compile_context>

<pallas_src>
import functools

import jax
import jax.numpy as jnp
from jax.experimental import pallas as pl
from jax.experimental.pallas import tpu as pltpu

_LANES = 128


def _ucb_single_block_kernel(mean_ref, var_ref, noise_ref, out_ref, *, scale, n_total):
    """Whole problem fits in one VMEM tile: compute, reduce, divide, done."""
    res = mean_ref[...] + jnp.float32(scale) * jnp.sqrt(var_ref[...] + noise_ref[...])
    out_ref[0, 0] = jnp.sum(res) / jnp.float32(n_total)


def _ucb_partial_sum_kernel(mean_ref, var_ref, noise_ref, out_ref, *, scale):
    """One independent block -> (8,128) partial sum (pure VPU adds)."""
    res = mean_ref[...] + jnp.float32(scale) * jnp.sqrt(var_ref[...] + noise_ref[...])
    br = res.shape[0]  # static block_rows, multiple of 8
    # (br,128) -> (br//8, 8, 128) follows the native (8,128) VMEM tiling, so the
    # reshape is layout-free and the reduce is elementwise vreg adds (no XLU).
    out_ref[...] = jnp.sum(res.reshape(br // 8, 8, _LANES), axis=0)


def _to_rows128(x):
    """Flatten to a lane-dense (rows, 128) f32 view, zero-padding if needed.

    Zero padding is exact for this op: mean=0, sqrt(0+0)=0 contributes nothing
    to the sum; we always divide by the TRUE element count.
    """
    flat = jnp.ravel(x).astype(jnp.float32)
    pad = (-flat.size) % _LANES
    if pad:
        flat = jnp.pad(flat, (0, pad))
    return flat.reshape(-1, _LANES)


def ucb_nucb(mean, variance, noise, *, beta=1.0, step_num=1, cost=1.0,
             block_rows=1024):
    """Pallas implementation of UCB_NUCB.forward. Returns a scalar f32."""
    scale = (1.0 / float(cost)) * (float(beta) ** int(step_num))
    n_total = mean.size

    m2 = _to_rows128(mean)
    v2 = _to_rows128(variance)
    n2 = _to_rows128(noise)
    rows = m2.shape[0]

    # Keep block_rows a multiple of 8 and small enough that
    # 3 inputs x 2 buffers x tile fits the v5e 16 MiB scoped-VMEM default.
    block_rows = max(8, (int(block_rows) // 8) * 8)
    block_rows = min(block_rows, 4096)

    if rows <= block_rows:
        # ---- single-step path: no accumulator, no phases, no grid overhead ----
        kernel = functools.partial(_ucb_single_block_kernel,
                                   scale=scale, n_total=n_total)
        out = pl.pallas_call(
            kernel,
            out_shape=jax.ShapeDtypeStruct((1, 1), jnp.float32),
            grid_spec=pltpu.PrefetchScalarGridSpec(
                num_scalar_prefetch=0,
                grid=(1,),
                in_specs=[pl.BlockSpec((rows, _LANES), lambda i: (0, 0))] * 3,
                out_specs=pl.BlockSpec(memory_space=pltpu.SMEM),
            ),
        )(m2, v2, n2)
        return out[0, 0]

    # ---- large path: parallel per-block partial sums (megacore-friendly) ----
    pad_rows = (-rows) % block_rows
    if pad_rows:
        zpad = jnp.zeros((pad_rows, _LANES), jnp.float32)
        m2 = jnp.concatenate([m2, zpad], axis=0)
        v2 = jnp.concatenate([v2, zpad], axis=0)
        n2 = jnp.concatenate([n2, zpad], axis=0)
    num_blocks = m2.shape[0] // block_rows

    kernel = functools.partial(_ucb_partial_sum_kernel, scale=scale)
    partials = pl.pallas_call(
        kernel,
        out_shape=jax.ShapeDtypeStruct((num_blocks * 8, _LANES), jnp.float32),
        grid_spec=pltpu.PrefetchScalarGridSpec(
            num_scalar_prefetch=0,
            grid=(num_blocks,),
            in_specs=[pl.BlockSpec((block_rows, _LANES), lambda i: (i, 0))] * 3,
            out_specs=pl.BlockSpec((8, _LANES), lambda i: (i, 0)),
        ),
        compiler_params=pltpu.CompilerParams(
            # Independent blocks -> shard across both TensorCores on v7x.
            dimension_semantics=("parallel",),
        ),
    )(m2, v2, n2)
    # Tiny final reduce + mean divide in plain JAX (num_blocks*8 x 128 elems).
    return jnp.sum(partials) / jnp.float32(n_total)


def _reference(mean, variance, noise, *, beta=1.0, step_num=1, cost=1.0):
    scale = (1.0 / float(cost)) * (float(beta) ** int(step_num))
    res = mean + scale * jnp.sqrt(variance + noise)
    return jnp.mean(res)


if __name__ == "__main__":
    key = jax.random.PRNGKey(0)
    k1, k2, k3 = jax.random.split(key, 3)

    # Small NCHW shapes consistent with typical use of the module.
    shape = (2, 4, 16, 16)
    mean = jax.random.normal(k1, shape, dtype=jnp.float32)
    variance = jax.random.uniform(k2, shape, dtype=jnp.float32)       # >= 0
    noise = jax.random.uniform(k3, shape, dtype=jnp.float32) * 0.1    # >= 0

    # Default path (single grid step for this size).
    out = ucb_nucb(mean, variance, noise, beta=1.0, step_num=1, cost=1.0)
    out = jax.block_until_ready(out)
    ref = _reference(mean, variance, noise, beta=1.0, step_num=1, cost=1.0)
    assert jnp.allclose(out, ref, rtol=1e-5, atol=1e-5), (out, ref)

    # Also exercise the parallel partial-sum path (forced small block_rows),
    # with non-trivial beta/step_num/cost.
    out2 = ucb_nucb(mean, variance, noise, beta=2.0, step_num=2, cost=0.5,
                    block_rows=8)
    out2 = jax.block_until_ready(out2)
    ref2 = _reference(mean, variance, noise, beta=2.0, step_num=2, cost=0.5)
    assert jnp.allclose(out2, ref2, rtol=1e-5, atol=1e-5), (out2, ref2)

    print("KERNEL_OK")
</pallas_src>

<mosaic_0001>
module attributes {stable_mosaic.version = 11 : i64} {
  func.func @_ucb_single_block_kernel(%arg0: i32, %arg1: memref<16x128xf32, #tpu.memory_space<vmem>>, %arg2: memref<16x128xf32, #tpu.memory_space<vmem>>, %arg3: memref<16x128xf32, #tpu.memory_space<vmem>>, %arg4: memref<1x1xf32, #tpu.memory_space<smem>>) attributes {dimension_semantics = [#tpu.dimension_semantics<arbitrary>], iteration_bounds = array<i64: 1>, scalar_prefetch = 0 : i64, scratch_operands = 0 : i64, tpu.core_type = #tpu.core_type<tc>, window_params = [{pipeline_mode = #tpu.pipeline_mode<synchronous>, transform_indices = @transform_0, window_bounds = array<i64: 16, 128>}, {pipeline_mode = #tpu.pipeline_mode<synchronous>, transform_indices = @transform_1, window_bounds = array<i64: 16, 128>}, {pipeline_mode = #tpu.pipeline_mode<synchronous>, transform_indices = @transform_2, window_bounds = array<i64: 16, 128>}, {transform_indices = @transform_3, window_bounds = array<i64: 1, 1>}]} {
    %c0 = arith.constant 0 : index
    %c0_0 = arith.constant 0 : index
    %0 = vector.load %arg1[%c0, %c0_0] : memref<16x128xf32, #tpu.memory_space<vmem>>, vector<16x128xf32>
    %c0_1 = arith.constant 0 : index
    %c0_2 = arith.constant 0 : index
    %1 = vector.load %arg2[%c0_1, %c0_2] : memref<16x128xf32, #tpu.memory_space<vmem>>, vector<16x128xf32>
    %c0_3 = arith.constant 0 : index
    %c0_4 = arith.constant 0 : index
    %2 = vector.load %arg3[%c0_3, %c0_4] : memref<16x128xf32, #tpu.memory_space<vmem>>, vector<16x128xf32>
    %3 = arith.addf %1, %2 : vector<16x128xf32>
    %4 = math.sqrt %3 : vector<16x128xf32>
    %cst = arith.constant 1.000000e+00 : f32
    %5 = vector.broadcast %cst : f32 to vector<16x128xf32>
    %6 = arith.mulf %5, %4 : vector<16x128xf32>
    %7 = arith.addf %0, %6 : vector<16x128xf32>
    %8 = vector.shape_cast %7 : vector<16x128xf32> to vector<1x16x128xf32>
    %cst_5 = arith.constant dense<0.000000e+00> : vector<1xf32>
    %9 = vector.multi_reduction <add>, %8, %cst_5 [1, 2] : vector<1x16x128xf32> to vector<1xf32>
    %10 = vector.shape_cast %9 : vector<1xf32> to vector<1x1x1xf32>
    %11 = vector.extract %10[0, 0, 0] : f32 from vector<1x1x1xf32>
    %cst_6 = arith.constant 2.048000e+03 : f32
    %12 = arith.divf %11, %cst_6 : f32
    %c0_7 = arith.constant 0 : index
    %c0_8 = arith.constant 0 : index
    %13 = memref.load %arg4[%c0_7, %c0_8] : memref<1x1xf32, #tpu.memory_space<smem>>
    memref.store %12, %arg4[%c0_7, %c0_8] : memref<1x1xf32, #tpu.memory_space<smem>>
    return
  }
  func.func @transform_0(%arg0: i32) -> (i32, i32) {
    %c0_i32 = arith.constant 0 : i32
    %c0_i32_0 = arith.constant 0 : i32
    %c0_i32_1 = arith.constant 0 : i32
    return %c0_i32, %c0_i32_0 : i32, i32
  }
  func.func @transform_1(%arg0: i32) -> (i32, i32) {
    %c0_i32 = arith.constant 0 : i32
    %c0_i32_0 = arith.constant 0 : i32
    %c0_i32_1 = arith.constant 0 : i32
    return %c0_i32, %c0_i32_0 : i32, i32
  }
  func.func @transform_2(%arg0: i32) -> (i32, i32) {
    %c0_i32 = arith.constant 0 : i32
    %c0_i32_0 = arith.constant 0 : i32
    %c0_i32_1 = arith.constant 0 : i32
    return %c0_i32, %c0_i32_0 : i32, i32
  }
  func.func @transform_3(%arg0: i32) -> (i32, i32) {
    %c0_i32 = arith.constant 0 : i32
    %c0_i32_0 = arith.constant 0 : i32
    %c0_i32_1 = arith.constant 0 : i32
    return %c0_i32, %c0_i32_0 : i32, i32
  }
}

</mosaic_0001>

<bundles_post_ra>
// kernel: tpu_custom_call.1
= control target key start
LH: loop header
LB: loop body
LE: loop exit
PB: predicated region body
PF: predicated region fallthrough
CT: control target
= control target key end

     0   :  { %8 = vsyncpa [#allocation3], 0  ;;  %s294_s0 = inlined_call_operand.hbm [shape: f32[16,128], index: 0, kind: input, shape index: {}]   ;;  %s295_s1 = inlined_call_operand.hbm [shape: f32[16,128], index: 1, kind: input, shape index: {}]   ;;  %s296_s2 = inlined_call_operand.hbm [shape: f32[16,128], index: 2, kind: input, shape index: {}]   ;;  %s297_s3 = inlined_call_operand.hbm [shape: f32[1,1], index: 3, kind: output, shape index: {}]  }
   0x1   :  { %9 = vsyncpa [#allocation6], 0 }
   0x2   :  { %10 = vsyncpa [#allocation4], 0  ;;  %s204_s12 = smov [#allocation5]   ;;  %s205_s14 = smov [#allocation2]  }
   0x3   :  { %s28_s13 = sshll.u32 %s204_s12, 4  ;;  %s16_s15 = sshll.u32 %s205_s14, 4  ;;  %s29_s13 = int_to_ptr.vmem [resolvable:$true] %s28_s13  ;;  %s230_s15 = int_to_ptr.vmem [resolvable:$true] %s16_s15 }
   0x4   :  { %s122_s18 = scalar_lea.hbm %s295_s1, 256 }
   0x5   :  { %p123_p0 = scmp.ne.s32.totalorder %s295_s1, %s122_s18  ;;  %p126_p1 = scmp.lt.u32.totalorder %s122_s18, %s295_s1 }
   0x7   :  { %p128_p2 = pnand %p126_p1, %p123_p0 }
   0x9   :  { %131 = shalt.err (!%p128_p2)
}
   0xa   :  { %s132_s23 = scalar_lea.vmem %s29_s13, 256  ;;  %p137_p4 = scmp.lt.s32.totalorder %s29_s13, %s29_s13 }
   0xb   :  { %p133_p3 = scmp.ne.s32.totalorder %s29_s13, %s132_s23  ;;  %p138_p5 = scmp.lt.s32.totalorder %s132_s23, %s132_s23 }
   0xd   :  { %p139_p6 = por %p138_p5, %p137_p4 }
   0xf   :  { %p140_p7 = pnand %p139_p6, %p133_p3 }
  0x11   :  { %143 = shalt.err (!%p140_p7)
}
  0x12   :  { %s206_s24 = smov 128   ;;  %s207_s25 = smov 8  }
  0x13   :  { %34 = dma.hbm_to_vmem [thread:$0]  %s295_s1, 256, %s29_s13, [#allocation6], %s206_s24, %s206_s24, %s207_s25  }
  0x14   :  { %s144_s30 = scalar_lea.hbm %s294_s0, 256 }
  0x15   :  { %p145_p8 = scmp.ne.s32.totalorder %s294_s0, %s144_s30  ;;  %p148_p9 = scmp.lt.u32.totalorder %s144_s30, %s294_s0 }
  0x17   :  { %p150_p10 = pnand %p148_p9, %p145_p8 }
  0x19   :  { %153 = shalt.err (!%p150_p10)
}
  0x1a   :  { %s154_s8 = scalar_lea.vmem %s230_s15, 256  ;;  %p159_p12 = scmp.lt.s32.totalorder %s230_s15, %s230_s15 }
  0x1b   :  { %p155_p11 = scmp.ne.s32.totalorder %s230_s15, %s154_s8  ;;  %p160_p13 = scmp.lt.s32.totalorder %s154_s8, %s154_s8 }
  0x1d   :  { %p161_p0 = por %p160_p13, %p159_p12 }
  0x1f   :  { %p162_p1 = pnand %p161_p0, %p155_p11 }
  0x21   :  { %165 = shalt.err (!%p162_p1)
}
  0x22   :  { %22 = dma.hbm_to_vmem [thread:$0]  %s294_s0, 256, %s230_s15, [#allocation3], %s206_s24, %s206_s24, %s207_s25  }
  0x23   :  { %s208_s10 = smov [#allocation7]   ;;  %s166_s14 = scalar_lea.hbm %s296_s2, 256 }
  0x24   :  { %s40_s11 = sshll.u32 %s208_s10, 4  ;;  %p167_p2 = scmp.ne.s32.totalorder %s296_s2, %s166_s14  ;;  %s41_s11 = int_to_ptr.vmem [resolvable:$true] %s40_s11 }
  0x25   :  { %p170_p3 = scmp.lt.u32.totalorder %s166_s14, %s296_s2 }
  0x27   :  { %p172_p4 = pnand %p170_p3, %p167_p2 }
  0x29   :  { %175 = shalt.err (!%p172_p4)
}
  0x2a   :  { %s176_s20 = scalar_lea.vmem %s41_s11, 256  ;;  %p181_p6 = scmp.lt.s32.totalorder %s41_s11, %s41_s11 }
  0x2b   :  { %p177_p5 = scmp.ne.s32.totalorder %s41_s11, %s176_s20  ;;  %p182_p7 = scmp.lt.s32.totalorder %s176_s20, %s176_s20 }
  0x2d   :  { %p183_p8 = por %p182_p7, %p181_p6 }
  0x2f   :  { %p184_p9 = pnand %p183_p8, %p177_p5 }
  0x31   :  { %187 = shalt.err (!%p184_p9)
}
  0x32   :  { %46 = dma.hbm_to_vmem [thread:$0]  %s296_s2, 256, %s41_s11, [#allocation6], %s206_s24, %s206_s24, %s207_s25  }
  0x33   :  { %198 = dma.done.wait [#allocation3], 256  }
  0x34   :  { %199 = vsyncadd [#allocation3], 4294967040 }
  0x35   :  { %200 = dma.done.wait [#allocation6], 512  }
  0x36   :  { %201 = vsyncadd [#allocation6], 4294966784  ;;  %v58_v0 = vld [vmem:[#allocation5] sm:$0xff]  ;;  %v59_v1 = vld [vmem:[#allocation5 + $0x8] sm:$0xff]  ;;  %s188_s24 = scalar_lea.hbm %s297_s3, 16 }
  0x37   :  { %v60_v2 = vld [vmem:[#allocation7] sm:$0xff]  ;;  %v61_v3 = vld [vmem:[#allocation7 + $0x8] sm:$0xff]  ;;  %p189_p10 = scmp.ne.s32.totalorder %s297_s3, %s188_s24  ;;  %p192_p11 = scmp.lt.u32.totalorder %s188_s24, %s297_s3 }
  0x38   :  { %v62_v4 = vadd.f32 %v60_v2, %v58_v0  ;;  %v63_v5 = vadd.f32 %v61_v3, %v59_v1  ;;  %v56_v11 = vld [vmem:[#allocation2] sm:$0xff]  ;;  %v57_v13 = vld [vmem:[#allocation2 + $0x8] sm:$0xff] }
  0x39   :  { %p194_p12 = pnand %p192_p11, %p189_p10 }
  0x3a   :  { %118 = vrsqrt.f32 %v62_v4  ;;  %vm66_vm0 = vcmp.eq.f32.partialorder %v62_v4, inf  ;;  %v69_v7 = vand.u32 2147483648, %v62_v4  ;;  %vm68_vm1 = vcmp.eq.f32.partialorder %v62_v4, 0.0 }
  0x3b   :  { %120 = vrsqrt.f32 %v63_v5  ;;  %vm73_vm2 = vcmp.eq.f32.partialorder %v63_v5, inf  ;;  %v76_v10 = vand.u32 2147483648, %v63_v5  ;;  %vm75_vm3 = vcmp.eq.f32.partialorder %v63_v5, 0.0 }
  0x44   :  { %v119_v6 = vpop.eup %118 }
  0x45   :  { %v121_v8 = vpop.eup %120  ;;  %v65_v9 = vmul.f32 %v119_v6, %v62_v4 }
  0x46   :  { %v72_v12 = vmul.f32 %v121_v8, %v63_v5 }
  0x47   :  { %v67_v14 = vsel %vm66_vm0, %v62_v4, %v65_v9 }
  0x48   :  { %v70_v15 = vsel %vm68_vm1, %v69_v7, %v67_v14  ;;  %v74_v16 = vsel %vm73_vm2, %v63_v5, %v72_v12 }
  0x49   :  { %v77_v17 = vsel %vm75_vm3, %v76_v10, %v74_v16  ;;  %v78_v18 = vadd.f32 %v70_v15, %v56_v11 }
  0x4a   :  { %v79_v19 = vadd.f32 %v77_v17, %v57_v13 }
  0x4c   :  { %v80_v20 = vadd.f32 %v79_v19, %v78_v18 }
  0x4e   :  { %81 = vadd.xlane.f32.xlu0 %v80_v20 }
  0xdb   :  { %v82_v21 = vpop.xlane.xlu0 %81 }
  0xdc   :  { %v83_v22 = vrot.slane %v82_v21, 4 }
  0xde   :  { %v84_v23 = vadd.f32 %v83_v22, %v82_v21 }
  0xe0   :  { %v85_v24 = vrot.slane %v84_v23, 2 }
  0xe2   :  { %v86_v25 = vadd.f32 %v85_v24, %v84_v23 }
  0xe4   :  { %v87_v26 = vrot.slane %v86_v25, 1 }
  0xe6   :  { %v88_v27 = vadd.f32 %v87_v26, %v86_v25 }
  0xe8   :  { %110 = vpush %v88_v27 }
 0x119   :  { %s111_s2 = spop %110 }
 0x11a   :  { %s92_s21 = smul.f32 0.00048828125, %s111_s2 }
 0x11c   :  { %94 = sst [smem:[#allocation8]] %s92_s21 }
 0x11d   :  { %197 = shalt.err (!%p194_p12)
}
 0x11e   :  { %s209_s29 = smov [#allocation8]  }
 0x11f   :  { %102 = dma.smem_to_hbm %s209_s29, 16, %s297_s3, [#allocation4]  }
 0x120   :  { %202 = dma.done.wait [#allocation4], 16  }
 0x121   :  { %203 = vsyncadd [#allocation4], 4294967280 }
 0x122   :  { %106 = sfence }
 0x123   :  { %107 = vsyncpa [#allocation3], 1 }
 0x124   :  { %108 = vsyncpa [#allocation6], 1 }
 0x125   :  { %109 = vsyncpa [#allocation4], 1 }

</bundles_post_ra>
